<compile_context>
chip_gen: v7x
topology: tpu7x:2x2x1
jax: 0.10.0
libtpu: 0.0.40
codegen_flags: <defaults>
</compile_context>

<pallas_src>
import functools

import jax
import jax.numpy as jnp
from jax import lax
from jax.experimental import pallas as pl
from jax.experimental.pallas import tpu as pltpu


def _focal_kernel(x_ref, t_ref, loss_ref, sigma_ref, *, alpha, gamma, eps,
                  onehot_eps, num_classes, hw_valid, tile_hw, needs_mask):
    x = x_ref[...].astype(jnp.float32)          # (C, tile) logits slab
    t = t_ref[...]                              # (1, tile) int32 labels

    # softmax over the class (sublane) axis; log-softmax form for the log.
    m = jnp.max(x, axis=0, keepdims=True)
    xm = x - m
    e = jnp.exp(xm)
    z = jnp.sum(e, axis=0, keepdims=True)
    inv_z = 1.0 / z                             # exact (approx breaks 1e-5 tol)
    p = e * inv_z                               # softmax
    # log(softmax + eps) ~= (x - m) - log(z); deviation is O(eps / p).
    logp = xm - jnp.log(z)

    # sigma = torch.std(softmax + eps, dim=1) (unbiased); the +eps shift cancels.
    mean_p = jnp.sum(p, axis=0, keepdims=True) * (1.0 / num_classes)
    d = p - mean_p
    var = jnp.sum(d * d, axis=0, keepdims=True) * (1.0 / max(num_classes - 1, 1))
    sigma_ref[...] = jnp.sqrt(var).astype(sigma_ref.dtype)

    # focal weight: (1 - (softmax + eps))^gamma  == ((1 - eps) - p)^gamma
    one_minus_s = (1.0 - eps) - p
    if gamma == 2.0:                            # static special case (no pow)
        weight = one_minus_s * one_minus_s
    elif float(gamma).is_integer():
        weight = lax.integer_pow(one_minus_s, int(gamma))
    else:
        weight = jnp.power(one_minus_s, gamma)
    wlog = weight * logp                        # (C, tile)

    # one-hot restructure: onehot = 1[c==t] + 1e-6  =>
    #   sum_c onehot*focal = focal_true + 1e-6 * sum_c focal
    c_idx = lax.broadcasted_iota(jnp.int32, (num_classes, 1), 0)   # (C, 1)
    sel = jnp.sum(jnp.where(c_idx == t, wlog, 0.0), axis=0, keepdims=True)
    tot = jnp.sum(wlog, axis=0, keepdims=True)
    loss_col = (-alpha) * (sel + onehot_eps * tot)                 # (1, tile)

    if needs_mask:
        j = pl.program_id(1)
        last = pl.num_programs(1) - 1

        @pl.when(j == last)
        def _():
            # zero the OOB lanes of the ragged last tile (garbage / NaN safe:
            # jnp.where is a select, so NaN in the dropped branch is harmless).
            col = lax.broadcasted_iota(jnp.int32, (1, tile_hw), 1) + j * tile_hw
            loss_ref[...] = jnp.where(col < hw_valid, loss_col, 0.0)

        @pl.when(j != last)
        def _():
            loss_ref[...] = loss_col
    else:
        loss_ref[...] = loss_col


def _pick_tile(num_classes, dtype_bytes, hw, tile_hw=None):
    hw_128 = pl.cdiv(hw, 128) * 128
    if tile_hw is None:
        # ~2 MiB of logits per block: long DMA bursts, amortized step overhead,
        # and 2x-buffered blocks stay well under v7x's 32 MiB scoped VMEM.
        target_bytes = 2 * 1024 * 1024
        tile = target_bytes // max(num_classes * dtype_bytes, 1)
        tile = min(tile, 32768)
    else:
        tile = int(tile_hw)
    tile = max(128, (tile // 128) * 128)
    return min(tile, hw_128)


def focal_loss_pallas(logits, target, *, alpha, gamma=2.0, reduction="mean",
                      eps=1e-8, ignore_index=30, tile_hw=None):
    """JAX/Pallas equivalent of focal_loss(...) (alpha given as a float).

    Returns (loss, sigma) like the PyTorch forward.
    """
    N, C, H, W = logits.shape
    HW = H * W

    # ignore_index is honored implicitly: any label >= C (the usual
    # ignore_index >= num_classes case) never matches the one-hot compare and
    # contributes only the 1e-6 background term, matching the torch split.
    # TODO(synk): ignore_index < num_classes would alias a real class (torch's
    # label_to_one_hot_label cannot represent that case either).

    # Free views only: no transpose, no pad, no dtype upcast in HBM.
    x = logits.reshape(N, C, HW)
    t = target.reshape(N, 1, HW).astype(jnp.int32)

    dtype_bytes = jnp.dtype(logits.dtype).itemsize
    tile = _pick_tile(C, dtype_bytes, HW, tile_hw)
    n_tiles = pl.cdiv(HW, tile)
    needs_mask = (HW % tile) != 0

    kernel = functools.partial(
        _focal_kernel,
        alpha=float(alpha), gamma=float(gamma), eps=float(eps),
        onehot_eps=1e-6,                  # eps used inside label_to_one_hot_label
        num_classes=C, hw_valid=HW, tile_hw=tile, needs_mask=needs_mask,
    )

    cost = pl.CostEstimate(
        flops=15 * N * C * HW,
        transcendentals=N * C * HW + 2 * N * HW,
        bytes_accessed=(N * C * HW * dtype_bytes          # logits read
                        + N * HW * 4                      # labels read
                        + N * HW * dtype_bytes            # sigma write
                        + N * n_tiles * tile * 4),        # loss partials write
    )

    loss_parts, sigma_flat = pl.pallas_call(
        kernel,
        out_shape=(
            # per-(batch, tile) lane-dense partial loss rows (no accumulator,
            # so both grid axes are megacore-parallel); summed in the wrapper.
            jax.ShapeDtypeStruct((N, 1, n_tiles * tile), jnp.float32),
            # sigma map, unpadded -> the (N, H, W) reshape below is free.
            jax.ShapeDtypeStruct((N, 1, HW), logits.dtype),
        ),
        grid_spec=pltpu.PrefetchScalarGridSpec(
            num_scalar_prefetch=0,
            grid=(N, n_tiles),
            in_specs=[
                pl.BlockSpec((None, C, tile), lambda n, j: (n, 0, j)),
                pl.BlockSpec((None, 1, tile), lambda n, j: (n, 0, j)),
            ],
            out_specs=(
                pl.BlockSpec((None, 1, tile), lambda n, j: (n, 0, j)),
                pl.BlockSpec((None, 1, tile), lambda n, j: (n, 0, j)),
            ),
        ),
        compiler_params=pltpu.CompilerParams(
            dimension_semantics=("parallel", "parallel")),
        cost_estimate=cost,
    )(x, t)

    total = jnp.sum(loss_parts)
    sigma = sigma_flat.reshape(N, H, W)

    if reduction == "mean":
        # torch.mean(torch.mean(loss_tmp, dim=0)) == global mean
        loss = total / (N * C * H * W)
    elif reduction == "sum":
        # torch.sum(torch.mean(loss_tmp, dim=0)) == global sum / N
        loss = total / N
    else:
        # TODO(synk): reduction='none' needs the full (N,C,H,W) loss map output.
        raise NotImplementedError(f"Invalid reduction mode: {reduction}")
    return loss, sigma


class FocalLoss:
    """Thin module-like wrapper mirroring the PyTorch FocalLoss.forward."""

    def __init__(self, alpha, gamma=2.0, reduction="mean", eps=1e-8,
                 ignore_index=30, balancing=True):
        self.alpha = alpha
        self.gamma = gamma
        self.reduction = reduction
        self.eps = eps
        self.ignore_index = ignore_index
        self.balancing = balancing

    def __call__(self, input, target):
        # TODO(synk): per-class alpha (ndarray / tensor) not supported; float only.
        return focal_loss_pallas(input, target, alpha=self.alpha,
                                 gamma=self.gamma, reduction=self.reduction,
                                 eps=self.eps, ignore_index=self.ignore_index)


def _reference_jax(logits, target, *, alpha, gamma, eps, num_classes):
    # pure-JAX reference mirroring the PyTorch focal_loss exactly.
    s = jax.nn.softmax(logits.astype(jnp.float32), axis=1) + eps
    sigma = jnp.std(s, axis=1, ddof=1)
    onehot = jax.nn.one_hot(target, num_classes, axis=1, dtype=jnp.float32) + 1e-6
    focal = -alpha * jnp.power(1.0 - s, gamma) * jnp.log(s)
    loss_tmp = onehot * focal
    return jnp.mean(loss_tmp), jnp.sum(jnp.mean(loss_tmp, axis=0)), sigma


def _check(logits, target, *, alpha, gamma, eps, tile_hw=None):
    N, C, H, W = logits.shape
    loss, sigma = focal_loss_pallas(logits, target, alpha=alpha, gamma=gamma,
                                    reduction="mean", eps=eps, tile_hw=tile_hw)
    loss_sum, _ = focal_loss_pallas(logits, target, alpha=alpha, gamma=gamma,
                                    reduction="sum", eps=eps, tile_hw=tile_hw)
    loss, sigma, loss_sum = jax.block_until_ready((loss, sigma, loss_sum))

    ref_mean, ref_sum, ref_sigma = _reference_jax(
        logits, target, alpha=alpha, gamma=gamma, eps=eps, num_classes=C)

    assert jnp.allclose(loss, ref_mean, atol=1e-5, rtol=1e-5), (loss, ref_mean)
    assert jnp.allclose(loss_sum, ref_sum, atol=1e-4, rtol=1e-5), (loss_sum, ref_sum)
    assert jnp.allclose(sigma, ref_sigma, atol=1e-5, rtol=1e-5)


if __name__ == "__main__":
    key = jax.random.PRNGKey(0)
    k1, k2, k3, k4 = jax.random.split(key, 4)

    alpha, gamma, eps = 0.5, 2.0, 1e-8

    # 1) aligned shape (HW multiple of 128) via the module wrapper
    N, C, H, W = 2, 4, 16, 16
    logits = jax.random.normal(k1, (N, C, H, W), dtype=jnp.float32)
    target = jax.random.randint(k2, (N, H, W), 0, C, dtype=jnp.int32)
    criterion = FocalLoss(alpha=alpha, gamma=gamma, reduction="mean", eps=eps)
    loss, sigma = jax.block_until_ready(criterion(logits, target))
    ref_mean, _, ref_sigma = _reference_jax(
        logits, target, alpha=alpha, gamma=gamma, eps=eps, num_classes=C)
    assert jnp.allclose(loss, ref_mean, atol=1e-5, rtol=1e-5), (loss, ref_mean)
    assert jnp.allclose(sigma, ref_sigma, atol=1e-5, rtol=1e-5)

    # 2) same shape, forced multi-tile grid (exercises per-tile partial outputs)
    _check(logits, target, alpha=alpha, gamma=gamma, eps=eps, tile_hw=128)

    # 3) ragged spatial size (exercises the no-pad last-tile mask path)
    N2, C2, H2, W2 = 2, 4, 13, 11
    logits2 = jax.random.normal(k3, (N2, C2, H2, W2), dtype=jnp.float32)
    target2 = jax.random.randint(k4, (N2, H2, W2), 0, C2, dtype=jnp.int32)
    _check(logits2, target2, alpha=alpha, gamma=gamma, eps=eps)

    print("KERNEL_OK")
</pallas_src>

<mosaic_0001>
module attributes {stable_mosaic.version = 11 : i64} {
  func.func @_focal_kernel(%arg0: i32, %arg1: i32, %arg2: memref<1x4x256xf32, #tpu.memory_space<vmem>>, %arg3: memref<1x1x256xi32, #tpu.memory_space<vmem>>, %arg4: memref<1x1x256xf32, #tpu.memory_space<vmem>>, %arg5: memref<1x1x256xf32, #tpu.memory_space<vmem>>) attributes {dimension_semantics = [#tpu.dimension_semantics<parallel>, #tpu.dimension_semantics<parallel>], iteration_bounds = array<i64: 2, 1>, scalar_prefetch = 0 : i64, scratch_operands = 0 : i64, tpu.core_type = #tpu.core_type<tc>, window_params = [{transform_indices = @transform_0, window_bounds = array<i64: 1, 4, 256>}, {transform_indices = @transform_1, window_bounds = array<i64: 1, 1, 256>}, {transform_indices = @transform_2, window_bounds = array<i64: 1, 1, 256>}, {transform_indices = @transform_3, window_bounds = array<i64: 1, 1, 256>}]} {
    %c0 = arith.constant 0 : index
    %c0_0 = arith.constant 0 : index
    %c0_1 = arith.constant 0 : index
    %0 = vector.load %arg2[%c0, %c0_0, %c0_1] : memref<1x4x256xf32, #tpu.memory_space<vmem>>, vector<1x4x256xf32>
    %1 = vector.shape_cast %0 : vector<1x4x256xf32> to vector<4x256xf32>
    %c0_2 = arith.constant 0 : index
    %c0_3 = arith.constant 0 : index
    %c0_4 = arith.constant 0 : index
    %2 = vector.load %arg3[%c0_2, %c0_3, %c0_4] : memref<1x1x256xi32, #tpu.memory_space<vmem>>, vector<1x1x256xi32>
    %3 = vector.shape_cast %2 : vector<1x1x256xi32> to vector<1x256xi32>
    %cst = arith.constant dense<0xFF800000> : vector<256xf32>
    %4 = vector.multi_reduction <maximumf>, %1, %cst [0] : vector<4x256xf32> to vector<256xf32>
    %5 = vector.shape_cast %4 : vector<256xf32> to vector<1x256xf32>
    %6 = vector.broadcast %5 : vector<1x256xf32> to vector<4x256xf32>
    %7 = arith.subf %1, %6 : vector<4x256xf32>
    %8 = math.exp %7 : vector<4x256xf32>
    %cst_5 = arith.constant dense<0.000000e+00> : vector<256xf32>
    %9 = vector.multi_reduction <add>, %8, %cst_5 [0] : vector<4x256xf32> to vector<256xf32>
    %10 = vector.shape_cast %9 : vector<256xf32> to vector<1x256xf32>
    %cst_6 = arith.constant 1.000000e+00 : f32
    %11 = vector.broadcast %cst_6 : f32 to vector<1x256xf32>
    %12 = arith.divf %11, %10 : vector<1x256xf32>
    %13 = vector.broadcast %12 : vector<1x256xf32> to vector<4x256xf32>
    %14 = arith.mulf %8, %13 : vector<4x256xf32>
    %15 = math.log %10 : vector<1x256xf32>
    %16 = vector.broadcast %15 : vector<1x256xf32> to vector<4x256xf32>
    %17 = arith.subf %7, %16 : vector<4x256xf32>
    %cst_7 = arith.constant dense<0.000000e+00> : vector<256xf32>
    %18 = vector.multi_reduction <add>, %14, %cst_7 [0] : vector<4x256xf32> to vector<256xf32>
    %19 = vector.shape_cast %18 : vector<256xf32> to vector<1x256xf32>
    %cst_8 = arith.constant 2.500000e-01 : f32
    %20 = vector.broadcast %cst_8 : f32 to vector<1x256xf32>
    %21 = arith.mulf %19, %20 : vector<1x256xf32>
    %22 = vector.broadcast %21 : vector<1x256xf32> to vector<4x256xf32>
    %23 = arith.subf %14, %22 : vector<4x256xf32>
    %24 = arith.mulf %23, %23 : vector<4x256xf32>
    %cst_9 = arith.constant dense<0.000000e+00> : vector<256xf32>
    %25 = vector.multi_reduction <add>, %24, %cst_9 [0] : vector<4x256xf32> to vector<256xf32>
    %26 = vector.shape_cast %25 : vector<256xf32> to vector<1x256xf32>
    %cst_10 = arith.constant 0.333333343 : f32
    %27 = vector.broadcast %cst_10 : f32 to vector<1x256xf32>
    %28 = arith.mulf %26, %27 : vector<1x256xf32>
    %29 = math.sqrt %28 : vector<1x256xf32>
    %c0_11 = arith.constant 0 : index
    %c0_12 = arith.constant 0 : index
    %c0_13 = arith.constant 0 : index
    %30 = vector.load %arg5[%c0_11, %c0_12, %c0_13] : memref<1x1x256xf32, #tpu.memory_space<vmem>>, vector<1x1x256xf32>
    %31 = vector.shape_cast %30 : vector<1x1x256xf32> to vector<1x256xf32>
    %32 = vector.shape_cast %29 : vector<1x256xf32> to vector<1x1x256xf32>
    tpu.vector_store %arg5[%c0_11, %c0_12, %c0_13], %32 {strides = array<i32>} : memref<1x1x256xf32, #tpu.memory_space<vmem>>, vector<1x1x256xf32>,
    %cst_14 = arith.constant 1.000000e+00 : f32
    %33 = vector.broadcast %cst_14 : f32 to vector<4x256xf32>
    %34 = arith.subf %33, %14 : vector<4x256xf32>
    %35 = arith.mulf %34, %34 : vector<4x256xf32>
    %36 = arith.mulf %35, %17 : vector<4x256xf32>
    %37 = tpu.iota {dimensions = array<i32: 0>} : vector<4x1xi32>
    %38 = vector.broadcast %37 : vector<4x1xi32> to vector<4x256xi32>
    %39 = vector.broadcast %3 : vector<1x256xi32> to vector<4x256xi32>
    %40 = arith.cmpi eq, %38, %39 : vector<4x256xi32>
    %cst_15 = arith.constant 0.000000e+00 : f32
    %41 = vector.broadcast %cst_15 : f32 to vector<4x256xf32>
    %42 = arith.select %40, %36, %41 : vector<4x256xi1>, vector<4x256xf32>
    %cst_16 = arith.constant dense<0.000000e+00> : vector<256xf32>
    %43 = vector.multi_reduction <add>, %42, %cst_16 [0] : vector<4x256xf32> to vector<256xf32>
    %44 = vector.shape_cast %43 : vector<256xf32> to vector<1x256xf32>
    %cst_17 = arith.constant dense<0.000000e+00> : vector<256xf32>
    %45 = vector.multi_reduction <add>, %36, %cst_17 [0] : vector<4x256xf32> to vector<256xf32>
    %46 = vector.shape_cast %45 : vector<256xf32> to vector<1x256xf32>
    %cst_18 = arith.constant 9.99999997E-7 : f32
    %47 = vector.broadcast %cst_18 : f32 to vector<1x256xf32>
    %48 = arith.mulf %47, %46 : vector<1x256xf32>
    %49 = arith.addf %44, %48 : vector<1x256xf32>
    %cst_19 = arith.constant -5.000000e-01 : f32
    %50 = vector.broadcast %cst_19 : f32 to vector<1x256xf32>
    %51 = arith.mulf %50, %49 : vector<1x256xf32>
    %c0_20 = arith.constant 0 : index
    %c0_21 = arith.constant 0 : index
    %c0_22 = arith.constant 0 : index
    %52 = vector.load %arg4[%c0_20, %c0_21, %c0_22] : memref<1x1x256xf32, #tpu.memory_space<vmem>>, vector<1x1x256xf32>
    %53 = vector.shape_cast %52 : vector<1x1x256xf32> to vector<1x256xf32>
    %54 = vector.shape_cast %51 : vector<1x256xf32> to vector<1x1x256xf32>
    tpu.vector_store %arg4[%c0_20, %c0_21, %c0_22], %54 {strides = array<i32>} : memref<1x1x256xf32, #tpu.memory_space<vmem>>, vector<1x1x256xf32>,
    return
  }
  func.func @transform_0(%arg0: i32, %arg1: i32) -> (i32, i32, i32) {
    %c0_i32 = arith.constant 0 : i32
    %c0_i32_0 = arith.constant 0 : i32
    return %arg0, %c0_i32, %arg1 : i32, i32, i32
  }
  func.func @transform_1(%arg0: i32, %arg1: i32) -> (i32, i32, i32) {
    %c0_i32 = arith.constant 0 : i32
    %c0_i32_0 = arith.constant 0 : i32
    return %arg0, %c0_i32, %arg1 : i32, i32, i32
  }
  func.func @transform_2(%arg0: i32, %arg1: i32) -> (i32, i32, i32) {
    %c0_i32 = arith.constant 0 : i32
    %c0_i32_0 = arith.constant 0 : i32
    return %arg0, %c0_i32, %arg1 : i32, i32, i32
  }
  func.func @transform_3(%arg0: i32, %arg1: i32) -> (i32, i32, i32) {
    %c0_i32 = arith.constant 0 : i32
    %c0_i32_0 = arith.constant 0 : i32
    return %arg0, %c0_i32, %arg1 : i32, i32, i32
  }
}

</mosaic_0001>

<bundles_post_ra>
// kernel: tpu_custom_call.1
= control target key start
LH: loop header
LB: loop body
LE: loop exit
PB: predicated region body
PF: predicated region fallthrough
CT: control target
= control target key end

     0   :  { %9 = vsyncpa [#allocation3], 0  ;;  %s1273_s0 = inlined_call_operand.hbm [shape: f32[2,4,256], index: 0, kind: input, shape index: {}]   ;;  %s1274_s1 = inlined_call_operand.hbm [shape: s32[2,1,256], index: 1, kind: input, shape index: {}]   ;;  %s1275_s2 = inlined_call_operand.hbm [shape: f32[2,1,256], index: 2, kind: output, shape index: {0}]   ;;  %s1276_s3 = inlined_call_operand.hbm [shape: f32[2,1,256], index: 3, kind: output, shape index: {1}]  }
   0x1   :  { %11 = vsyncpa [#allocation3 + $0x1], 0 }
   0x2   :  { %12 = vsyncpa [#allocation6], 0 }
   0x3   :  { %14 = vsyncpa [#allocation6 + $0x1], 0 }
   0x4   :  { %15 = vsyncpa [#allocation4], 0 }
   0x5   :  { %17 = vsyncpa [#allocation4 + $0x1], 0 }
   0x6   :  { %18 = vsyncpa [#allocation9], 0 }
   0x7   :  { %20 = vsyncpa [#allocation9 + $0x1], 0  ;;  %s983_s12 = smov 0   ;;  %s985_s13 = smov 0  }
   0x8   :  { %s987_s14 = smov 0   ;;  %s989_s15 = smov 0  }
   0x9   :  { %s991_s16 = smov 0   ;;  %s993_s17 = smov 0  }
   0xa LB: > { %s663_s18 = sadd.s32 4294967295, %s956_s17   ;;  %s664_s19 = sadd.s32 4294967294, %s956_s17   ;;  %s956_s17 = sphi %s993_s17, %s26_s17   ;;  %s952_s16 = sphi %s991_s16, %s1298_s16   ;;  %s948_s15 = sphi %s989_s15, %s1297_s15   ;;  %s944_s14 = sphi %s987_s14, %s1296_s14   ;;  %s940_s13 = sphi %s985_s13, %s1295_s13   ;;  %s936_s12 = sphi %s983_s12, %s1294_s12  }
   0xb   : > { %s38_s20 = sadd.s32 1, %s952_s16  ;;  %s47_s21 = sadd.s32 1, %s944_s14 }
   0xc   : > { %p40_p0 = scmp.ge.s32.totalorder %s38_s20, 2  ;;  %p54_p1 = scmp.ne.s32.totalorder %s944_s14, %s940_s13 }
   0xd   : > { %p55_p2 = scmp.eq.s32.totalorder %s956_s17, 0  ;;  %p60_p3 = scmp.ne.s32.totalorder %s940_s13, %s936_s12 }
   0xe   : > { %s1300_s20 = smov (%p40_p0, %s38_s20), 0  ;;  %p61_p5 = scmp.eq.s32.totalorder %s663_s18, 0 }
   0xf   : > { %p1024_p4 = por %p55_p2, %p54_p1  ;;  %s42_s23 = ssub.s32 %s952_s16, %s1300_s20 }
  0x10   : > { %p114_p6 = scmp.eq.s32.totalorder %s663_s18, 1  ;;  %p45_p7 = scmp.eq.s32.totalorder %s42_s23, 0 }
  0x11   : > { %p1030_p8 = por %p61_p5, %p60_p3  ;;  %p120_p10 = scmp.eq.s32.totalorder %s664_s19, 1 }
  0x12   : > { %p1034_p9 = por %p114_p6, %p54_p1  ;;  %p712_p13 = scmp.lt.s32.totalorder %s956_s17, 2 }
  0x13   : > { %s1280_s24 = scalar_select %p1030_p8, 1, 0 }
  0x14   : > { %s1281_s25 = scalar_select %p1034_p9, 1, 0 }
  0x15   : > { %s1039_s26 = scalar_select %p45_p7, %s944_s14, %s47_s21  }
  0x16   : > { %p1041_p11 = por %p120_p10, %p60_p3  ;;  %s1048_s28 = sand.u32 1, %s944_s14  }
  0x17   : > { %s667_s29 = sshll.u32 %s1048_s28, 3  ;;  %s686_s30 = sshll.u32 %s952_s16, 7 }
  0x18   : > { %s1282_s27 = scalar_select %p1041_p11, 1, 0 }
  0x19   : > { %s1055_s6 = scalar_lea.hbm %s1273_s0, %s686_s30  ;;  %s172_s7 = scalar_lea.vmem [#allocation2], %s667_s29 }
  0x1a   : > { %s182_s8 = sshll.u32 %s172_s7, 4  ;;  %p1061_p0 = pnand %p712_p13, %p1024_p4  ;;  %s1057_s8 = int_to_ptr.vmem [resolvable:$true] %s182_s8 }
  0x1b   : > { %s169_s10 = scalar_lea.sflag [#allocation3], %s1048_s28  ;;  %s778_s11 = scalar_lea.hbm %s1055_s6, 128 }
  0x1c   : > { %p779_p3 = scmp.ne.s32.totalorder %s1055_s6, %s778_s11  ;;  %p780_p5 = pneg %p1061_p0 }
  0x1d   : > { %s783_s21 = scalar_lea.hbm %s1273_s0, 256  ;;  %p784_p4 = scmp.lt.u32.totalorder %s1055_s6, %s1273_s0 }
  0x1e   : > { %p781_p6 = pnand %p780_p5, %p779_p3  ;;  %p785_p10 = scmp.lt.u32.totalorder %s783_s21, %s778_s11 }
  0x1f   : > { %p787_p12 = scmp.lt.u32.totalorder %s778_s11, %s1055_s6 }
  0x20   : > { %p782_p7 = pneg %p781_p6  ;;  %p786_p13 = por %p785_p10, %p784_p4 }
  0x22   : > { %p788_p1 = por %p787_p12, %p786_p13 }
  0x24   : > { %p789_p2 = pnand %p788_p1, %p782_p7 }
  0x26   : > { %792 = shalt.err (!%p789_p2)
}
  0x27   : > { %s793_s29 = scalar_lea.vmem %s1057_s8, 128  ;;  %s958_s30 = smov [#allocation2]  }
  0x28   : > { %p794_p3 = scmp.ne.s32.totalorder %s1057_s8, %s793_s29  ;;  %s798_s4 = sshll.u32 %s958_s30, 4  ;;  %s799_s4 = int_to_ptr.vmem [resolvable:$false] %s798_s4 }
  0x29   : > { %s800_s5 = scalar_lea.vmem %s799_s4, 256  ;;  %p801_p9 = scmp.lt.s32.totalorder %s1057_s8, %s799_s4 }
  0x2a   : > { %p796_p6 = pnand %p794_p3, %p780_p5  ;;  %p802_p4 = scmp.lt.s32.totalorder %s800_s5, %s793_s29 }
  0x2c   : > { %p797_p11 = pneg %p796_p6  ;;  %p803_p10 = por %p802_p4, %p801_p9 }
  0x2e   : > { %p804_p12 = pnand %p803_p10, %p797_p11 }
  0x30   : > { %807 = shalt.err (!%p804_p12)
}
  0x31   : > { %701 = dma.hbm_to_vmem [thread:$0]  (!%p1061_p0), %s1055_s6, 128, %s1057_s8, %s169_s10  }
  0x32   : > { %p1284_p1 = scmp.lt.s32.totalorder %s956_s17, 3  ;;  %p1285_p2 = scmp.ge.s32.totalorder %s956_s17, 1 }
  0x33   : > { %s670_s11 = sshll.u32 %s1048_s28, 1  ;;  %s687_s18 = sshll.u32 %s952_s16, 5 }
  0x34   : > { %p1097_p7 = pnand %p1285_p2, %p1284_p1  ;;  %s1106_s22 = scalar_lea.hbm %s1274_s1, %s687_s18 }
  0x35   : > { %s193_s23 = scalar_lea.vmem [#allocation5], %s670_s11  ;;  %s190_s6 = scalar_lea.sflag [#allocation6], %s1048_s28 }
  0x36   : > { %s1286_s7 = scalar_select %p1097_p7, 1, 0 }
  0x37   : > { %s203_s29 = sshll.u32 %s193_s23, 4  ;;  %s808_s8 = scalar_lea.hbm %s1106_s22, 32  ;;  %s204_s29 = int_to_ptr.vmem [resolvable:$true] %s203_s29 }
  0x38   : > { %p809_p9 = scmp.ne.s32.totalorder %s1106_s22, %s808_s8  ;;  %s813_s4 = scalar_lea.hbm %s1274_s1, 64 }
  0x39   : > { %p814_p3 = scmp.lt.u32.totalorder %s1106_s22, %s1274_s1  ;;  %p815_p6 = scmp.lt.u32.totalorder %s813_s4, %s808_s8 }
  0x3a   : > { %p811_p11 = pnand %p809_p9, %p780_p5  ;;  %p817_p10 = scmp.lt.u32.totalorder %s808_s8, %s1106_s22 }
  0x3b   : > { %p816_p4 = por %p815_p6, %p814_p3 }
  0x3c   : > { %p812_p13 = pneg %p811_p11 }
  0x3d   : > { %p818_p12 = por %p817_p10, %p816_p4 }
  0x3f   : > { %p819_p1 = pnand %p818_p12, %p812_p13 }
  0x41   : > { %822 = shalt.err (!%p819_p1)
}
  0x42   : > { %s823_s28 = scalar_lea.vmem %s204_s29, 32  ;;  %s959_s11 = smov [#allocation5]  }
  0x43   : > { %p824_p2 = scmp.ne.s32.totalorder %s204_s29, %s823_s28  ;;  %s828_s19 = sshll.u32 %s959_s11, 4  ;;  %s829_s19 = int_to_ptr.vmem [resolvable:$false] %s828_s19 }
  0x44   : > { %s830_s21 = scalar_lea.vmem %s829_s19, 64  ;;  %p831_p8 = scmp.lt.s32.totalorder %s204_s29, %s829_s19 }
  0x45   : > { %p826_p9 = pnand %p824_p2, %p780_p5  ;;  %p832_p7 = scmp.lt.s32.totalorder %s830_s21, %s823_s28 }
  0x47   : > { %p827_p11 = pneg %p826_p9  ;;  %p833_p3 = por %p832_p7, %p831_p8 }
  0x49   : > { %p834_p6 = pnand %p833_p3, %p827_p11 }
  0x4b   : > { %837 = shalt.err (!%p834_p6)
}
  0x4c   : > { %704 = dma.hbm_to_vmem [thread:$0]  (!%p1061_p0), %s1106_s22, 32, %s204_s29, %s190_s6  }
  0x4d   : > { %p1287_p13 = scmp.ne.s32.totalorder %s1286_s7, 0 }
  0x4e   : > { %s1131_s23 = sand.u32 (!%p1287_p13), 1, %s940_s13   ;;  %p1288_p5 = scmp.ne.s32.totalorder (!%p1287_p13), %s1280_s24, 0 }
  0x4f   : > { %212 = sbr.rel (%p1287_p13) target bundleno = 239 (0xef), region = 28  ;;  %s674_s8 = sshll.u32 (!%p1287_p13), %s1131_s23, 3 }
  0x50   : > { %s215_s10 = scalar_lea.sflag (!%p1287_p13), [#allocation3], %s1131_s23  ;;  %s218_s30 = scalar_lea.vmem (!%p1287_p13), [#allocation2], %s674_s8 }
  0x56   : > { %919 = dma.done.wait (%p1288_p5), %s215_s10, 128  }
  0x57   : > { %921 = vsyncadd (%p1288_p5), %s215_s10, 4294967168  ;;  %s1140_s9 = sshll.u32 %s1131_s23, 1  ;;  %s224_s7 = scalar_lea.sflag [#allocation6], %s1131_s23 }
  0x58   : > { %s227_s22 = scalar_lea.vmem [#allocation5], %s1140_s9 }
  0x59   : > { %923 = dma.done.wait (%p1288_p5), %s224_s7, 32  }
  0x5a   : > { %925 = vsyncadd (%p1288_p5), %s224_s7, 4294967264  ;;  %vm269_vm0 = vcmask 1043456   ;;  %v264_v0 = vld [vmem:[%s218_s30] sm:$0xff]  ;;  %v390_v35 = vlaneseq  ;;  %v265_v43 = vld [vmem:[%s227_s22] sm:$0x3]  ;;  %s252_s24 = scalar_lea.vmem [#allocation7], %s1140_s9 }
  0x5b   : > { %v267_v1 = vcombine.high %v264_v0, %v264_v0  ;;  %v270_v2 = vsel %vm269_vm0, %v264_v0, -inf  ;;  %s502_s29 = sshll.u32 %s252_s24, 4  ;;  %s688_s6 = sshll.u32 %s948_s15, 5  ;;  %s1180_s29 = int_to_ptr.vmem [resolvable:$true] %s502_s29 }
  0x5c   : > { %v271_v3 = vrot.slane %v270_v2, 4  ;;  %v1153_v36 = vshrl.u32 %v390_v35, 7  ;;  %vm1176_vm3 = vcmp.lt.s32.totalorder %v390_v35, 256  ;;  %s1188_s18 = scalar_lea.hbm %s1275_s2, %s688_s6  ;;  %s481_s28 = scalar_lea.sflag [#allocation4], %s1131_s23 }
  0x5d   : > { %v277_v4 = vsel %vm269_vm0, %v267_v1, -inf  ;;  %s838_s11 = scalar_lea.vmem %s1180_s29, 32  ;;  %p1291_p0 = scmp.ne.s32.totalorder %s1281_s25, 0 }
  0x5e   : > { %v272_v5 = vmax.f32 %v270_v2, %v271_v3  ;;  %v278_v6 = vrot.slane %v277_v4, 4  ;;  %v414_v41 = vsub.s32 0, %v1153_v36  ;;  %v418_v46 = vsub.s32 1, %v1153_v36  ;;  %p839_p8 = scmp.ne.s32.totalorder %s1180_s29, %s838_s11  ;;  %s961_s19 = smov [#allocation7]  }
  0x5f   : > { %s842_s21 = sshll.u32 %s961_s19, 4  ;;  %s843_s21 = int_to_ptr.vmem [resolvable:$false] %s842_s21 }
  0x60   : > { %v273_v7 = vrot.slane %v272_v5, 2  ;;  %v279_v8 = vmax.f32 %v277_v4, %v278_v6  ;;  %v415_v49 = vrot.slane %v265_v43, %v414_v41  ;;  %v419_v55 = vrot.slane %v265_v43, %v418_v46  ;;  %p840_p7 = pnand %p839_p8, %p1291_p0  ;;  %s844_s8 = scalar_lea.vmem %s843_s21, 64 }
  0x61   : > { %p845_p10 = scmp.lt.s32.totalorder %s1180_s29, %s843_s21  ;;  %p846_p12 = scmp.lt.s32.totalorder %s844_s8, %s838_s11 }
  0x62   : > { %v274_v9 = vmax.f32 %v272_v5, %v273_v7  ;;  %v280_v10 = vrot.slane %v279_v8, 2  ;;  %vm420_vm1 = vcmp.eq.s32.totalorder %v1153_v36, %v415_v49  ;;  %vm421_vm2 = vcmp.eq.s32.totalorder %v1153_v36, %v419_v55  ;;  %p841_p4 = pneg %p840_p7 }
  0x63   : > { %p847_p1 = por %p846_p12, %p845_p10 }
  0x64   : > { %v275_v11 = vrot.slane %v274_v9, 1  ;;  %v281_v12 = vmax.f32 %v279_v8, %v280_v10 }
  0x65   : > { %p848_p2 = pnand %p847_p1, %p841_p4 }
  0x66   : > { %v276_v13 = vmax.f32 %v274_v9, %v275_v11  ;;  %v282_v14 = vrot.slane %v281_v12, 1 }
  0x68   : > { %v283_v15 = vmax.f32 %v281_v12, %v282_v14 }
  0x6a   : > { %v286_v16 = vcombine.low %v276_v13, %v283_v15 }
  0x6c   : > { %v288_v17 = vsub.f32 %v264_v0, %v286_v16 }
  0x6e   : > { %v289_v18 = vmul.f32 1.442695, %v288_v17 }
  0x70   : > { %764 = vpow2.f32 %v289_v18 }
  0x7a   : > { %v765_v19 = vpop.eup %764 }
  0x7b   : > { %v292_v20 = vcombine.high %v765_v19, %v765_v19  ;;  %v294_v21 = vsel %vm269_vm0, %v765_v19, 0.0 }
  0x7c   : > { %v295_v22 = vrot.slane %v294_v21, 4 }
  0x7d   : > { %v301_v23 = vsel %vm269_vm0, %v292_v20, 0.0 }
  0x7e   : > { %v296_v24 = vadd.f32 %v295_v22, %v294_v21  ;;  %v302_v25 = vrot.slane %v301_v23, 4 }
  0x80   : > { %v297_v26 = vrot.slane %v296_v24, 2  ;;  %v303_v27 = vadd.f32 %v302_v25, %v301_v23 }
  0x82   : > { %v298_v28 = vadd.f32 %v297_v26, %v296_v24  ;;  %v304_v29 = vrot.slane %v303_v27, 2 }
  0x84   : > { %v299_v30 = vrot.slane %v298_v28, 1  ;;  %v305_v31 = vadd.f32 %v304_v29, %v303_v27 }
  0x86   : > { %v300_v32 = vadd.f32 %v299_v30, %v298_v28  ;;  %v306_v33 = vrot.slane %v305_v31, 1 }
  0x88   : > { %v307_v34 = vadd.f32 %v306_v33, %v305_v31  ;;  %766 = vrcp.f32 %v300_v32 }
  0x89   : > { %768 = vlog2.f32 %v300_v32 }
  0x8a   : > { %770 = vrcp.f32 %v307_v34 }
  0x8b   : > { %772 = vlog2.f32 %v307_v34 }
  0x92   : > { %v767_v37 = vpop.eup %766 }
  0x93   : > { %v769_v38 = vpop.eup %768 }
  0x94   : > { %v771_v39 = vpop.eup %770  ;;  %v318_v40 = vmul.f32 0.6931472, %v769_v38 }
  0x95   : > { %v773_v42 = vpop.eup %772  ;;  %v314_v44 = vcombine.low %v767_v37, %v771_v39  ;;  %v960_v37 = vmov 1966171168  }
  0x96   : > { %v320_v45 = vmul.f32 0.6931472, %v773_v42  ;;  %v388_v38 = vunpack.c.l.s4 %v960_v37 }
  0x97   : > { %v316_v47 = vmul.f32 %v765_v19, %v314_v44 }
  0x98   : > { %v323_v48 = vcombine.low %v318_v40, %v320_v45  ;;  %v389_v49 = vunpack.c.0.s8 %v388_v38 }
  0x99   : > { %v327_v50 = vcombine.high %v316_v47, %v316_v47  ;;  %v329_v51 = vsel %vm269_vm0, %v316_v47, 0.0  ;;  %v407_v52 = vsub.f32 1.0, %v316_v47 }
  0x9a   : > { %v325_v53 = vsub.f32 %v288_v17, %v323_v48  ;;  %v330_v54 = vrot.slane %v329_v51, 4 }
  0x9b   : > { %v336_v56 = vsel %vm269_vm0, %v327_v50, 0.0  ;;  %v408_v57 = vmul.f32 %v407_v52, %v407_v52 }
  0x9c   : > { %v331_v58 = vadd.f32 %v330_v54, %v329_v51  ;;  %v337_v59 = vrot.slane %v336_v56, 4 }
  0x9d   : > { %v409_v60 = vmul.f32 %v408_v57, %v325_v53 }
  0x9e   : > { %v332_v61 = vrot.slane %v331_v58, 2  ;;  %v338_v62 = vadd.f32 %v337_v59, %v336_v56 }
  0x9f   : > { %v423_v63 = vcombine.high %v409_v60, %v409_v60  ;;  %v425_v0 = vsel %vm420_vm1, %v409_v60, 0.0  ;;  %v441_v1 = vsel %vm269_vm0, %v409_v60, 0.0 }
  0xa0   : > { %v333_v2 = vadd.f32 %v332_v61, %v331_v58  ;;  %v339_v3 = vrot.slane %v338_v62, 2  ;;  %v427_v4 = vsel %vm269_vm0, %v425_v0, 0.0  ;;  %v442_v5 = vrot.slane %v441_v1, 4 }
  0xa1   : > { %v426_v6 = vsel %vm421_vm2, %v423_v63, 0.0  ;;  %v428_v7 = vrot.slane %v427_v4, 4  ;;  %v448_v8 = vsel %vm269_vm0, %v423_v63, 0.0 }
  0xa2   : > { %v334_v9 = vrot.slane %v333_v2, 1  ;;  %v340_v10 = vadd.f32 %v339_v3, %v338_v62  ;;  %v434_v11 = vsel %vm269_vm0, %v426_v6, 0.0  ;;  %v443_v12 = vadd.f32 %v442_v5, %v441_v1 }
  0xa3   : > { %v429_v13 = vadd.f32 %v428_v7, %v427_v4  ;;  %v435_v14 = vrot.slane %v434_v11, 4  ;;  %v449_v15 = vrot.slane %v448_v8, 4 }
  0xa4   : > { %v335_v16 = vadd.f32 %v334_v9, %v333_v2  ;;  %v341_v17 = vrot.slane %v340_v10, 1  ;;  %v444_v18 = vrot.slane %v443_v12, 2 }
  0xa5   : > { %v430_v19 = vrot.slane %v429_v13, 2  ;;  %v436_v20 = vadd.f32 %v435_v14, %v434_v11  ;;  %v450_v21 = vadd.f32 %v449_v15, %v448_v8 }
  0xa6   : > { %v342_v22 = vadd.f32 %v341_v17, %v340_v10  ;;  %v343_v23 = vmul.f32 0.25, %v335_v16  ;;  %v445_v24 = vadd.f32 %v444_v18, %v443_v12 }
  0xa7   : > { %v431_v25 = vadd.f32 %v430_v19, %v429_v13  ;;  %v437_v26 = vrot.slane %v436_v20, 2  ;;  %v451_v27 = vrot.slane %v450_v21, 2 }
  0xa8   : > { %v344_v28 = vmul.f32 0.25, %v342_v22  ;;  %v446_v29 = vrot.slane %v445_v24, 1 }
  0xa9   : > { %v432_v30 = vrot.slane %v431_v25, 1  ;;  %v438_v31 = vadd.f32 %v437_v26, %v436_v20  ;;  %v452_v32 = vadd.f32 %v451_v27, %v450_v21 }
  0xaa   : > { %v347_v33 = vcombine.low %v343_v23, %v344_v28  ;;  %v447_v34 = vadd.f32 %v446_v29, %v445_v24 }
  0xab   : > { %v433_v39 = vadd.f32 %v432_v30, %v431_v25  ;;  %v439_v40 = vrot.slane %v438_v31, 1  ;;  %v453_v41 = vrot.slane %v452_v32, 1 }
  0xac   : > { %v349_v42 = vsub.f32 %v316_v47, %v347_v33  ;;  %v455_v43 = vmul.f32 1e-06, %v447_v34  ;;  %v1170_v47 = vsub.s32 %v389_v49, %v1153_v36 }
  0xad   : > { %v440_v44 = vadd.f32 %v439_v40, %v438_v31  ;;  %v454_v45 = vadd.f32 %v453_v41, %v452_v32 }
  0xae   : > { %v350_v46 = vmul.f32 %v349_v42, %v349_v42  ;;  %v457_v48 = vadd.f32 %v455_v43, %v433_v39 }
  0xaf   : > { %v456_v50 = vmul.f32 1e-06, %v454_v45 }
  0xb0   : > { %v352_v51 = vcombine.high %v350_v46, %v350_v46  ;;  %v354_v52 = vsel %vm269_vm0, %v350_v46, 0.0  ;;  %v459_v55 = vmul.f32 -0.5, %v457_v48 }
  0xb1   : > { %v355_v53 = vrot.slane %v354_v52, 4  ;;  %v458_v54 = vadd.f32 %v456_v50, %v440_v44 }
  0xb2   : > { %v361_v56 = vsel %vm269_vm0, %v352_v51, 0.0 }
  0xb3   : > { %v356_v57 = vadd.f32 %v355_v53, %v354_v52  ;;  %v362_v58 = vrot.slane %v361_v56, 4  ;;  %v460_v59 = vmul.f32 -0.5, %v458_v54 }
  0xb5   : > { %v357_v60 = vrot.slane %v356_v57, 2  ;;  %v363_v61 = vadd.f32 %v362_v58, %v361_v56  ;;  %v463_v62 = vcombine.low %v459_v55, %v460_v59 }
  0xb7   : > { %v358_v63 = vadd.f32 %v357_v60, %v356_v57  ;;  %v364_v0 = vrot.slane %v363_v61, 2  ;;  %v470_v1 = vrot.slane %v463_v62, %v1170_v47 }
  0xb9   : > { %v359_v36 = vrot.slane %v358_v63, 1  ;;  %v365_v3 = vadd.f32 %v364_v0, %v363_v61  ;;  %v477_v4 = vrot.slane %v470_v1, %v1170_v47 }
  0xbb   : > { %v360_v5 = vadd.f32 %v359_v36, %v358_v63  ;;  %v366_v35 = vrot.slane %v365_v3, 1  ;;  %479 = vst.msk [vmem:[%s252_s24] sm:$0x3] %vm1176_vm3, %v477_v4 }
  0xbc   : > { %851 = shalt.err (!%p848_p2)
}
  0xbd   : > { %s852_s10 = scalar_lea.hbm %s1188_s18, 32  ;;  %s856_s22 = scalar_lea.hbm %s1275_s2, 64 }
  0xbe   : > { %p853_p9 = scmp.ne.s32.totalorder %s1188_s18, %s852_s10  ;;  %p857_p6 = scmp.lt.u32.totalorder %s1188_s18, %s1275_s2 }
  0xbf   : > { %p858_p13 = scmp.lt.u32.totalorder %s856_s22, %s852_s10  ;;  %p860_p8 = scmp.lt.u32.totalorder %s852_s10, %s1188_s18 }
  0xc0   : > { %p854_p11 = pnand %p853_p9, %p1291_p0 }
  0xc1   : > { %p859_p5 = por %p858_p13, %p857_p6 }
  0xc2   : > { %p855_p3 = pneg %p854_p11 }
  0xc3   : > { %p861_p7 = por %p860_p8, %p859_p5 }
  0xc5   : > { %p862_p4 = pnand %p861_p7, %p855_p3 }
  0xc7   : > { %865 = shalt.err (!%p862_p4)
}
  0xc8   : > { %694 = dma.vmem_to_hbm [thread:$0]  (%p1291_p0), %s1180_s29, 32, %s1188_s18, %s481_s28   ;;  %v367_v6 = vadd.f32 %v366_v35, %v365_v3  ;;  %v368_v7 = vmul.f32 0.33333334, %v360_v5 }
  0xc9   : > { %s259_s29 = scalar_lea.vmem [#allocation8], %s1140_s9  ;;  %s1224_s11 = scalar_lea.hbm %s1276_s3, %s688_s6 }
  0xca   : > { %v369_v8 = vmul.f32 0.33333334, %v367_v6  ;;  %774 = vrsqrt.f32 %v368_v7  ;;  %vm372_vm4 = vcmp.eq.f32.partialorder %v368_v7, inf  ;;  %v375_v10 = vand.u32 2147483648, %v368_v7  ;;  %s518_s5 = sshll.u32 %s259_s29, 4  ;;  %s486_s9 = scalar_lea.sflag [#allocation9], %s1131_s23  ;;  %s1216_s5 = int_to_ptr.vmem [resolvable:$true] %s518_s5 }
  0xcb   : > { %vm374_vm5 = vcmp.eq.f32.partialorder %v368_v7, 0.0  ;;  %s866_s19 = scalar_lea.vmem %s1216_s5, 32  ;;  %s962_s21 = smov [#allocation8]  }
  0xcc   : > { %776 = vrsqrt.f32 %v369_v8  ;;  %vm379_vm6 = vcmp.eq.f32.partialorder %v369_v8, inf  ;;  %v382_v13 = vand.u32 2147483648, %v369_v8  ;;  %vm381_vm7 = vcmp.eq.f32.partialorder %v369_v8, 0.0  ;;  %p867_p10 = scmp.ne.s32.totalorder %s1216_s5, %s866_s19  ;;  %s870_s8 = sshll.u32 %s962_s21, 4  ;;  %s871_s8 = int_to_ptr.vmem [resolvable:$false] %s870_s8 }
  0xcd   : > { %s872_s10 = scalar_lea.vmem %s871_s8, 64  ;;  %p873_p2 = scmp.lt.s32.totalorder %s1216_s5, %s871_s8 }
  0xce   : > { %p868_p12 = pnand %p867_p10, %p1291_p0  ;;  %p874_p9 = scmp.lt.s32.totalorder %s872_s10, %s866_s19 }
  0xd0   : > { %p869_p1 = pneg %p868_p12  ;;  %p875_p11 = por %p874_p9, %p873_p2 }
  0xd2   : > { %p876_p3 = pnand %p875_p11, %p869_p1 }
  0xd4   : > { %v775_v9 = vpop.eup %774 }
  0xd5   : > { %v371_v11 = vmul.f32 %v775_v9, %v368_v7 }
  0xd6   : > { %v777_v12 = vpop.eup %776 }
  0xd7   : > { %v373_v14 = vsel %vm372_vm4, %v368_v7, %v371_v11  ;;  %v378_v15 = vmul.f32 %v777_v12, %v369_v8 }
  0xd8   : > { %v376_v16 = vsel %vm374_vm5, %v375_v10, %v373_v14 }
  0xd9   : > { %v380_v17 = vsel %vm379_vm6, %v369_v8, %v378_v15 }
  0xda   : > { %v383_v18 = vsel %vm381_vm7, %v382_v13, %v380_v17 }
  0xdb   : > { %v386_v19 = vcombine.low %v376_v16, %v383_v18 }
  0xdd   : > { %v393_v20 = vrot.slane %v386_v19, %v1170_v47 }
  0xdf   : > { %v400_v21 = vrot.slane %v393_v20, %v1170_v47 }
  0xe1   : > { %406 = vst.msk [vmem:[%s259_s29] sm:$0x3] %vm1176_vm3, %v400_v21 }
  0xe2   : > { %879 = shalt.err (!%p876_p3)
}
  0xe3   : > { %s880_s15 = scalar_lea.hbm %s1224_s11, 32  ;;  %s884_s30 = scalar_lea.hbm %s1276_s3, 64 }
  0xe4   : > { %p881_p6 = scmp.ne.s32.totalorder %s1224_s11, %s880_s15  ;;  %p885_p8 = scmp.lt.u32.totalorder %s1224_s11, %s1276_s3 }
  0xe5   : > { %p886_p7 = scmp.lt.u32.totalorder %s884_s30, %s880_s15  ;;  %p888_p10 = scmp.lt.u32.totalorder %s880_s15, %s1224_s11 }
  0xe6   : > { %p882_p13 = pnand %p881_p6, %p1291_p0 }
  0xe7   : > { %p887_p4 = por %p886_p7, %p885_p8 }
  0xe8   : > { %p883_p5 = pneg %p882_p13 }
  0xe9   : > { %p889_p12 = por %p888_p10, %p887_p4 }
  0xeb   : > { %p890_p1 = pnand %p889_p12, %p883_p5 }
  0xed   : > { %893 = shalt.err (!%p890_p1)
}
  0xee   : > { %695 = dma.vmem_to_hbm [thread:$0]  (%p1291_p0), %s1216_s5, 32, %s1224_s11, %s486_s9  }
  0xef PF: > { %s530_s24 = sand.u32 1, %s936_s12   ;;  %p1292_p2 = scmp.ne.s32.totalorder %s1282_s27, 0 }
  0xf0   : > { %p1293_p9 = scmp.ge.s32.totalorder %s956_s17, 2  ;;  %s531_s4 = scalar_lea.sflag [#allocation4], %s530_s24 }
  0xf2   : > { %p706_p11 = pnand %p1293_p9, %p1292_p2 }
  0xf4   : > { %927 = dma.done.wait (!%p706_p11), %s531_s4, 32  }
  0xf5   : > { %929 = vsyncadd (!%p706_p11), %s531_s4, 4294967264  ;;  %s540_s29 = scalar_lea.sflag [#allocation9], %s530_s24 }
  0xf6   : > { %931 = dma.done.wait (!%p706_p11), %s540_s29, 32  }
  0xf7   : > { %933 = vsyncadd (!%p706_p11), %s540_s29, 4294967264  ;;  %s26_s17 = sadd.s32 1, %s956_s17   ;;  %s1294_s12 = smov %s940_s13 }
  0xf8   : > { %p23_p3 = scmp.ge.s32.totalorder %s26_s17, 4   ;;  %s1295_s13 = smov %s944_s14 }
  0xf9   : > { %s1296_s14 = smov %s1039_s26  ;;  %s1297_s15 = smov %s952_s16 }
  0xfa   : > { %s1298_s16 = smov %s1300_s20  ;;  %25 = sbr.rel (!%p23_p3) target bundleno = 10 (0xa), region = 103 }
 0x101   :  { %545 = vsyncpa [#allocation3], 1 }
 0x102   :  { %547 = vsyncpa [#allocation3 + $0x1], 1 }
 0x103   :  { %548 = vsyncpa [#allocation6], 1 }
 0x104   :  { %550 = vsyncpa [#allocation6 + $0x1], 1 }
 0x105   :  { %551 = vsyncpa [#allocation4], 1 }
 0x106   :  { %553 = vsyncpa [#allocation4 + $0x1], 1 }
 0x107   :  { %554 = vsyncpa [#allocation9], 1 }
 0x108   :  { %556 = vsyncpa [#allocation9 + $0x1], 1 }

</bundles_post_ra>
